<compile_context>
chip_gen: v5e
topology: v5e:2x2
jax: 0.10.0
libtpu: 0.0.40
codegen_flags: <defaults>
</compile_context>

<pallas_src>
import functools
import math

import jax
import jax.numpy as jnp
from jax.experimental import pallas as pl
from jax.experimental.pallas import tpu as pltpu


def _round_up(x, m):
    return ((x + m - 1) // m) * m


def _cdiv(a, b):
    return (a + b - 1) // b


def _pad_cast_2d(a, rows, cols, dtype):
    """Pad a 2-D array with zeros to (rows, cols) and cast; no-op if already there."""
    r, c = a.shape
    if (r, c) == (rows, cols):
        return a if a.dtype == dtype else a.astype(dtype)
    out = jnp.zeros((rows, cols), dtype)
    return out.at[:r, :c].set(a.astype(dtype))


def _ffn_kernel(x_ref, w1_ref, b1_ref, w2_ref, b2_ref, o_ref, acc_ref, *,
                approximate_gelu):
    """One (row-tile i, d_ff-tile k) step of linear1 -> GELU -> linear2."""
    k = pl.program_id(1)

    @pl.when(k == 0)
    def _():
        acc_ref[...] = jnp.zeros_like(acc_ref)

    # linear1 on this d_ff slice: bf16 MXU inputs, f32 accumulation.
    h = jnp.dot(x_ref[...], w1_ref[...],
                preferred_element_type=jnp.float32) + b1_ref[...]   # (tm, tk) f32

    if approximate_gelu:
        # tanh GELU: tanh goes to the EUP (separate VLIW slot) instead of a
        # ~20-op VALU erf polynomial.
        c = jnp.float32(math.sqrt(2.0 / math.pi))
        g = 0.5 * h * (1.0 + jnp.tanh(c * (h + jnp.float32(0.044715) * (h * h * h))))
    else:
        # exact (erf) GELU -- matches torch.nn.functional.gelu default bit-for-bit
        # semantics but saturates the VALUs once the MXU stops being the bottleneck.
        g = 0.5 * h * (1.0 + jax.lax.erf(h * jnp.float32(1.0 / math.sqrt(2.0))))

    # dropout: identity (eval mode).
    # TODO(synk): training-mode dropout (pltpu.prng_seed + stateful_bernoulli) not implemented.

    # partial linear2 contribution of this d_ff slice, accumulated in f32 VMEM.
    acc_ref[...] += jnp.dot(g.astype(w2_ref.dtype), w2_ref[...],
                            preferred_element_type=jnp.float32)

    @pl.when(k == pl.num_programs(1) - 1)
    def _():
        # b2 is added once at finalize (not per reduction step).
        o_ref[...] = (acc_ref[...] + b2_ref[...]).astype(o_ref.dtype)


def feed_forward(x, w1, b1, w2, b2, *, tm=None, tk=None, approximate_gelu=True):
    """FeedForward forward pass: linear2(GELU(linear1(x))), dropout = identity.

    x:  (B, S, d_model)
    w1: (d_model, d_ff),  b1: (d_ff,)
    w2: (d_ff, d_model),  b2: (d_model,)
    """
    B, S, d_model = x.shape
    d_ff = w1.shape[1]
    M = B * S
    out_dtype = x.dtype
    out_isz = jnp.dtype(out_dtype).itemsize

    # ---- generation-aware tile targets and VMEM capacity ----
    try:
        kind = jax.devices()[0].device_kind.lower()
    except Exception:
        kind = ""
    try:
        vmem_cap = pltpu.get_tpu_info().vmem_capacity_bytes
    except Exception:
        vmem_cap = 64 * 1024 * 1024          # conservative (v7x per-TC)

    if "v5" in kind:
        tm_t, tk_t = 512, 1024               # ~240 FLOP/B corner; big tk cuts acc RMW passes
    elif "v6" in kind:
        tm_t, tk_t = 1024, 512               # ~650 FLOP/B corner, 128 MiB VMEM
    else:                                    # v7x / unknown: ~310 FLOP/B, 64 MiB per TC
        tm_t, tk_t = 512, 512
    if tm is None:
        tm = tm_t
    if tk is None:
        tk = tk_t

    # lane dim: multiple of 256 on the 2x256x256 MXUs when d_model is large,
    # 128 otherwise (and always on v5e's 4x128x128 MXU).
    lane_mult = 256 if (("v6" in kind or "7" in kind) and d_model > 256) else 128
    d_model_p = _round_up(d_model, lane_mult)

    tm = min(tm, _round_up(M, 8))
    tk = min(tk, _round_up(d_ff, 128))

    # v7x megacore: the "parallel" row axis is sharded across 2 TensorCores,
    # so prefer >= 2 row tiles when there is enough work.
    if "7" in kind and M >= 512 and _cdiv(M, tm) < 2:
        tm = min(tm, _round_up((M + 1) // 2, 256))

    # ---- shrink tm until the real VMEM footprint fits ----
    # x / acc / out tiles are resident across k; w1/w2/b1/b2 slices are
    # double-buffered by the pipeline.
    def _vmem_need(tm_, tk_):
        resident = tm_ * d_model_p * (2 + 4 + out_isz)      # x(bf16) + acc(f32) + out
        streamed = 2 * (d_model_p * tk_ * 2                 # w1 slice (bf16)
                        + tk_ * d_model_p * 2               # w2 slice (bf16)
                        + tk_ * 4 + d_model_p * 4)          # bias slices (f32)
        return resident + streamed

    while tm > 8 and _vmem_need(tm, tk) > 0.8 * vmem_cap:
        tm = max(8, _round_up(tm // 2, 8))

    Mp = _round_up(M, tm)
    d_ff_p = _round_up(d_ff, tk)

    # ---- pad / cast only when needed (no per-call weight copy if aligned) ----
    # zero padding keeps the math exact; padded rows/cols are sliced off.
    x2d = _pad_cast_2d(x.reshape(M, d_model), Mp, d_model_p, jnp.bfloat16)
    w1p = _pad_cast_2d(w1, d_model_p, d_ff_p, jnp.bfloat16)
    w2p = _pad_cast_2d(w2, d_ff_p, d_model_p, jnp.bfloat16)
    b1p = _pad_cast_2d(b1.reshape(1, -1), 1, d_ff_p, jnp.float32)
    b2p = _pad_cast_2d(b2.reshape(1, -1), 1, d_model_p, jnp.float32)

    n_row_tiles = Mp // tm
    cost = pl.CostEstimate(
        flops=2 * 2 * M * d_model * d_ff,                   # two matmuls
        transcendentals=M * d_ff,                           # tanh / erf
        bytes_accessed=(Mp * d_model_p * 2                  # x read (bf16)
                        + n_row_tiles * (w1p.size * 2 + w2p.size * 2
                                         + b1p.size * 4 + b2p.size * 4)
                        + Mp * d_model_p * out_isz))        # output write

    kernel = functools.partial(_ffn_kernel, approximate_gelu=approximate_gelu)

    # NOTE: if profiling shows exposed weight DMA after raising tm, add
    # pipeline_mode=pl.Buffered(3) to the w1/w2 BlockSpecs (check VMEM on v7x).
    out2d = pl.pallas_call(
        kernel,
        out_shape=jax.ShapeDtypeStruct((Mp, d_model_p), out_dtype),
        grid_spec=pltpu.PrefetchScalarGridSpec(
            num_scalar_prefetch=0,
            grid=(Mp // tm, d_ff_p // tk),
            in_specs=[
                pl.BlockSpec((tm, d_model_p), lambda i, k: (i, 0)),   # x rows (resident over k)
                pl.BlockSpec((d_model_p, tk), lambda i, k: (0, k)),   # w1 d_ff-slice (streamed)
                pl.BlockSpec((1, tk),         lambda i, k: (0, k)),   # b1 slice
                pl.BlockSpec((tk, d_model_p), lambda i, k: (k, 0)),   # w2 d_ff-slice (streamed)
                pl.BlockSpec((1, d_model_p),  lambda i, k: (0, 0)),   # b2 (constant)
            ],
            out_specs=pl.BlockSpec((tm, d_model_p), lambda i, k: (i, 0)),
            scratch_shapes=[pltpu.VMEM((tm, d_model_p), jnp.float32)],
        ),
        compiler_params=pltpu.CompilerParams(
            dimension_semantics=("parallel", "arbitrary"),
            vmem_limit_bytes=int(0.85 * vmem_cap)),
        cost_estimate=cost,
    )(x2d, w1p, b1p, w2p, b2p)

    return out2d[:M, :d_model].reshape(B, S, d_model)


def _init_linear(key, fan_in, fan_out):
    """Deterministic init mimicking nn.Linear (uniform +/- 1/sqrt(fan_in))."""
    kw, kb = jax.random.split(key)
    bound = 1.0 / math.sqrt(fan_in)
    w = jax.random.uniform(kw, (fan_in, fan_out), jnp.float32, -bound, bound)
    b = jax.random.uniform(kb, (fan_out,), jnp.float32, -bound, bound)
    return w, b


def _reference(x, w1, b1, w2, b2):
    """Pure-JAX reference with torch's default exact-erf GELU."""
    h = x @ w1 + b1
    g = 0.5 * h * (1.0 + jax.lax.erf(h / jnp.sqrt(2.0)))
    return g @ w2 + b2


if __name__ == "__main__":
    d_model, d_ff = 32, 64
    B, S = 2, 8

    key = jax.random.PRNGKey(0)
    kx, k1, k2 = jax.random.split(key, 3)
    x = jax.random.normal(kx, (B, S, d_model), jnp.float32)
    w1, b1 = _init_linear(k1, d_model, d_ff)
    w2, b2 = _init_linear(k2, d_ff, d_model)

    out = feed_forward(x, w1, b1, w2, b2)
    out = jax.block_until_ready(out)

    ref = _reference(x, w1, b1, w2, b2)
    assert out.shape == (B, S, d_model)
    # bf16 MXU inputs + tanh-approx GELU => loosened tolerance vs f32/erf reference.
    assert jnp.allclose(out, ref, atol=3e-2, rtol=3e-2), "mismatch vs reference"

    print("KERNEL_OK")
</pallas_src>

<mosaic_0001>
module attributes {stable_mosaic.version = 11 : i64} {
  func.func @_ffn_kernel(%arg0: i32, %arg1: i32, %arg2: memref<16x128xbf16, #tpu.memory_space<vmem>>, %arg3: memref<128x128xbf16, #tpu.memory_space<vmem>>, %arg4: memref<1x128xf32, #tpu.memory_space<vmem>>, %arg5: memref<128x128xbf16, #tpu.memory_space<vmem>>, %arg6: memref<1x128xf32, #tpu.memory_space<vmem>>, %arg7: memref<16x128xf32, #tpu.memory_space<vmem>>, %arg8: memref<16x128xf32, #tpu.memory_space<vmem>>) attributes {dimension_semantics = [#tpu.dimension_semantics<parallel>, #tpu.dimension_semantics<arbitrary>], iteration_bounds = array<i64: 1, 1>, scalar_prefetch = 0 : i64, scratch_operands = 1 : i64, tpu.core_type = #tpu.core_type<tc>, window_params = [{transform_indices = @transform_0, window_bounds = array<i64: 16, 128>}, {transform_indices = @transform_1, window_bounds = array<i64: 128, 128>}, {transform_indices = @transform_2, window_bounds = array<i64: 1, 128>}, {transform_indices = @transform_3, window_bounds = array<i64: 128, 128>}, {pipeline_mode = #tpu.pipeline_mode<synchronous>, transform_indices = @transform_4, window_bounds = array<i64: 1, 128>}, {transform_indices = @transform_5, window_bounds = array<i64: 16, 128>}]} {
    %c0_i32 = arith.constant 0 : i32
    %0 = arith.cmpi eq, %arg1, %c0_i32 : i32
    %1 = arith.extui %0 : i1 to i32
    %c0_i32_0 = arith.constant 0 : i32
    %2 = arith.cmpi ne, %1, %c0_i32_0 : i32
    scf.if %2 {
      %cst_19 = arith.constant 0.000000e+00 : f32
      %31 = vector.broadcast %cst_19 : f32 to vector<16x128xf32>
      %c0_20 = arith.constant 0 : index
      %c0_21 = arith.constant 0 : index
      %32 = vector.load %arg8[%c0_20, %c0_21] : memref<16x128xf32, #tpu.memory_space<vmem>>, vector<16x128xf32>
      tpu.vector_store %arg8[%c0_20, %c0_21], %31 {strides = array<i32>} : memref<16x128xf32, #tpu.memory_space<vmem>>, vector<16x128xf32>,
    } else {
    }
    %c0 = arith.constant 0 : index
    %c0_1 = arith.constant 0 : index
    %3 = vector.load %arg2[%c0, %c0_1] : memref<16x128xbf16, #tpu.memory_space<vmem>>, vector<16x128xbf16>
    %c0_2 = arith.constant 0 : index
    %c0_3 = arith.constant 0 : index
    %4 = vector.load %arg3[%c0_2, %c0_3] : memref<128x128xbf16, #tpu.memory_space<vmem>>, vector<128x128xbf16>
    %cst = arith.constant dense<0.000000e+00> : vector<16x128xf32>
    %5 = tpu.matmul %3, %4, %cst {dimension_numbers = #tpu.dot_dimension_numbers<[1], [0], [0], [1], [0, 0, 1, 1], [], []>} : vector<16x128xbf16>, vector<128x128xbf16>, vector<16x128xf32> -> vector<16x128xf32>
    %c0_4 = arith.constant 0 : index
    %c0_5 = arith.constant 0 : index
    %6 = vector.load %arg4[%c0_4, %c0_5] : memref<1x128xf32, #tpu.memory_space<vmem>>, vector<1x128xf32>
    %7 = vector.broadcast %6 : vector<1x128xf32> to vector<16x128xf32>
    %8 = arith.addf %5, %7 : vector<16x128xf32>
    %cst_6 = arith.constant 5.000000e-01 : f32
    %9 = vector.broadcast %cst_6 : f32 to vector<16x128xf32>
    %10 = arith.mulf %9, %8 : vector<16x128xf32>
    %11 = arith.mulf %8, %8 : vector<16x128xf32>
    %12 = arith.mulf %11, %8 : vector<16x128xf32>
    %cst_7 = arith.constant 4.471500e-02 : f32
    %13 = vector.broadcast %cst_7 : f32 to vector<16x128xf32>
    %14 = arith.mulf %13, %12 : vector<16x128xf32>
    %15 = arith.addf %8, %14 : vector<16x128xf32>
    %cst_8 = arith.constant 0.797884583 : f32
    %16 = vector.broadcast %cst_8 : f32 to vector<16x128xf32>
    %17 = arith.mulf %16, %15 : vector<16x128xf32>
    %18 = math.tanh %17 : vector<16x128xf32>
    %cst_9 = arith.constant 1.000000e+00 : f32
    %19 = vector.broadcast %cst_9 : f32 to vector<16x128xf32>
    %20 = arith.addf %19, %18 : vector<16x128xf32>
    %21 = arith.mulf %10, %20 : vector<16x128xf32>
    %c0_10 = arith.constant 0 : index
    %c0_11 = arith.constant 0 : index
    %22 = vector.load %arg8[%c0_10, %c0_11] : memref<16x128xf32, #tpu.memory_space<vmem>>, vector<16x128xf32>
    %23 = arith.truncf %21 : vector<16x128xf32> to vector<16x128xbf16>
    %c0_12 = arith.constant 0 : index
    %c0_13 = arith.constant 0 : index
    %24 = vector.load %arg5[%c0_12, %c0_13] : memref<128x128xbf16, #tpu.memory_space<vmem>>, vector<128x128xbf16>
    %cst_14 = arith.constant dense<0.000000e+00> : vector<16x128xf32>
    %25 = tpu.matmul %23, %24, %cst_14 {dimension_numbers = #tpu.dot_dimension_numbers<[1], [0], [0], [1], [0, 0, 1, 1], [], []>} : vector<16x128xbf16>, vector<128x128xbf16>, vector<16x128xf32> -> vector<16x128xf32>
    %26 = arith.addf %22, %25 : vector<16x128xf32>
    %c0_15 = arith.constant 0 : index
    %c0_16 = arith.constant 0 : index
    %27 = vector.load %arg8[%c0_15, %c0_16] : memref<16x128xf32, #tpu.memory_space<vmem>>, vector<16x128xf32>
    tpu.vector_store %arg8[%c0_15, %c0_16], %26 {strides = array<i32>} : memref<16x128xf32, #tpu.memory_space<vmem>>, vector<16x128xf32>,
    %c0_i32_17 = arith.constant 0 : i32
    %28 = arith.cmpi eq, %arg1, %c0_i32_17 : i32
    %29 = arith.extui %28 : i1 to i32
    %c0_i32_18 = arith.constant 0 : i32
    %30 = arith.cmpi ne, %29, %c0_i32_18 : i32
    scf.if %30 {
      %c0_19 = arith.constant 0 : index
      %c0_20 = arith.constant 0 : index
      %31 = vector.load %arg8[%c0_19, %c0_20] : memref<16x128xf32, #tpu.memory_space<vmem>>, vector<16x128xf32>
      %c0_21 = arith.constant 0 : index
      %c0_22 = arith.constant 0 : index
      %32 = vector.load %arg6[%c0_21, %c0_22] : memref<1x128xf32, #tpu.memory_space<vmem>>, vector<1x128xf32>
      %33 = vector.broadcast %32 : vector<1x128xf32> to vector<16x128xf32>
      %34 = arith.addf %31, %33 : vector<16x128xf32>
      %c0_23 = arith.constant 0 : index
      %c0_24 = arith.constant 0 : index
      %35 = vector.load %arg7[%c0_23, %c0_24] : memref<16x128xf32, #tpu.memory_space<vmem>>, vector<16x128xf32>
      tpu.vector_store %arg7[%c0_23, %c0_24], %34 {strides = array<i32>} : memref<16x128xf32, #tpu.memory_space<vmem>>, vector<16x128xf32>,
    } else {
    }
    return
  }
  func.func @transform_0(%arg0: i32, %arg1: i32) -> (i32, i32) {
    %c0_i32 = arith.constant 0 : i32
    %c0_i32_0 = arith.constant 0 : i32
    return %arg0, %c0_i32 : i32, i32
  }
  func.func @transform_1(%arg0: i32, %arg1: i32) -> (i32, i32) {
    %c0_i32 = arith.constant 0 : i32
    %c0_i32_0 = arith.constant 0 : i32
    return %c0_i32, %arg1 : i32, i32
  }
  func.func @transform_2(%arg0: i32, %arg1: i32) -> (i32, i32) {
    %c0_i32 = arith.constant 0 : i32
    %c0_i32_0 = arith.constant 0 : i32
    return %c0_i32, %arg1 : i32, i32
  }
  func.func @transform_3(%arg0: i32, %arg1: i32) -> (i32, i32) {
    %c0_i32 = arith.constant 0 : i32
    %c0_i32_0 = arith.constant 0 : i32
    return %arg1, %c0_i32 : i32, i32
  }
  func.func @transform_4(%arg0: i32, %arg1: i32) -> (i32, i32) {
    %c0_i32 = arith.constant 0 : i32
    %c0_i32_0 = arith.constant 0 : i32
    %c0_i32_1 = arith.constant 0 : i32
    return %c0_i32, %c0_i32_0 : i32, i32
  }
  func.func @transform_5(%arg0: i32, %arg1: i32) -> (i32, i32) {
    %c0_i32 = arith.constant 0 : i32
    %c0_i32_0 = arith.constant 0 : i32
    return %arg0, %c0_i32 : i32, i32
  }
}

</mosaic_0001>

<bundles_post_ra>
// kernel: tpu_custom_call.1
= control target key start
LH: loop header
LB: loop body
LE: loop exit
PB: predicated region body
PF: predicated region fallthrough
CT: control target
= control target key end

     0   :  { %10 = vsyncpa [#allocation4], 0  ;;  %s557_s0 = inlined_call_operand.hbm [shape: bf16[16,128], index: 0, kind: input, shape index: {}]   ;;  %s558_s1 = inlined_call_operand.hbm [shape: bf16[128,128], index: 1, kind: input, shape index: {}]   ;;  %s559_s2 = inlined_call_operand.vmem [shape: f32[1,128], index: 2, kind: input, shape index: {}]   ;;  %s560_s3 = inlined_call_operand.hbm [shape: bf16[128,128], index: 3, kind: input, shape index: {}]   ;;  %s561_s4 = inlined_call_operand.vmem [shape: f32[1,128], index: 4, kind: input, shape index: {}]   ;;  %s562_s5 = inlined_call_operand.hbm [shape: f32[16,128], index: 5, kind: output, shape index: {}]  }
   0x1   :  { %11 = vsyncpa [#allocation7], 0 }
   0x2   :  { %12 = vsyncpa [#allocation5], 0  ;;  %s30_s20 = sshll.u32 %s558_s1, 4  ;;  %s501_s21 = smov [#allocation6]   ;;  %s31_s20 = int_to_ptr.hbm [resolvable:$true] %s30_s20 }
   0x3   :  { %s32_s22 = sshll.u32 %s501_s21, 4  ;;  %s17_s25 = sshll.u32 %s557_s0, 4  ;;  %s33_s22 = int_to_ptr.vmem [resolvable:$true] %s32_s22  ;;  %s18_s25 = int_to_ptr.hbm [resolvable:$true] %s17_s25 }
   0x4   :  { %s502_s26 = smov 64   ;;  %s503_s27 = smov 4  }
   0x5   :  { %38 = dma.hbm_to_vmem [thread:$0]  %s31_s20, 1024, %s33_s22, [#allocation7], %s502_s26, %s502_s26, %s503_s27  }
   0x6   :  { %s504_s28 = smov [#allocation3]   ;;  %s45_s7 = sshll.u32 %s560_s3, 4  ;;  %s46_s7 = int_to_ptr.hbm [resolvable:$true] %s45_s7 }
   0x7   :  { %s19_s29 = sshll.u32 %s504_s28, 4  ;;  %s505_s1 = smov [#allocation8]   ;;  %s20_s29 = int_to_ptr.vmem [resolvable:$true] %s19_s29 }
   0x8   :  { %25 = dma.hbm_to_vmem [thread:$0]  %s18_s25, 128, %s20_s29, [#allocation4], %s502_s26, %s502_s26, %s503_s27  }
   0x9   :  { %s47_s8 = sshll.u32 %s505_s1, 4  ;;  %s48_s8 = int_to_ptr.vmem [resolvable:$true] %s47_s8 }
   0xa   :  { %53 = dma.hbm_to_vmem [thread:$0]  %s46_s7, 1024, %s48_s8, [#allocation7], %s502_s26, %s502_s26, %s503_s27  }
   0xb   :  { %495 = dma.done.wait [#allocation4], 128  }
   0xc   :  { %496 = vsyncadd [#allocation4], 4294967168 }
   0xd   :  { %497 = dma.done.wait [#allocation7], 2048  }
   0xe   :  { %498 = vsyncadd [#allocation7], 4294965248  ;;  %v376_v0 = vld [vmem:[#allocation6 + $0x38] sm:$0xff]  ;;  %v375_v1 = vld [vmem:[#allocation6 + $0x30] sm:$0xff]  ;;  %s506_s10 = smov [#allocation9]   ;;  %s286_s14 = sshll.u32 %s562_s5, 4  ;;  %s287_s14 = int_to_ptr.hbm [resolvable:$true] %s286_s14 }
   0xf   :  { %150 = vmatpush.bf16.msra.mxu0 %v376_v0  ;;  %v374_v2 = vld [vmem:[#allocation6 + $0x28] sm:$0xff]  ;;  %v373_v3 = vld [vmem:[#allocation6 + $0x20] sm:$0xff]  ;;  %v372_v4 = vld [vmem:[#allocation6 + $0x18] sm:$0xff]  ;;  %s284_s11 = sshll.u32 %s506_s10, 4  ;;  %s507_s15 = smov 128   ;;  %s285_s11 = int_to_ptr.vmem [resolvable:$true] %s284_s11 }
  0x10   :  { %v371_v5 = vld [vmem:[#allocation6 + $0x10] sm:$0xff]  ;;  %v370_v6 = vld [vmem:[#allocation6 + $0x8] sm:$0xff]  ;;  %v369_v7 = vld [vmem:[#allocation6] sm:$0xff]  ;;  %s508_s16 = smov 8  }
  0x11   :  { %v368_v8 = vld [vmem:[#allocation3] sm:$0xff]  ;;  %v383_v10 = vld [vmem:[#allocation8 + $0x30] sm:$0xff]  ;;  %v382_v11 = vld [vmem:[#allocation8 + $0x28] sm:$0xff] }
  0x12   :  { %v384_v9 = vld [vmem:[#allocation8 + $0x38] sm:$0xff]  ;;  %v381_v12 = vld [vmem:[#allocation8 + $0x20] sm:$0xff]  ;;  %v379_v14 = vld [vmem:[#allocation8 + $0x10] sm:$0xff] }
  0x13   :  { %151 = vmatpush.bf16.msra.mxu0 %v375_v1  ;;  %249 = vmatpush.bf16.msra.mxu1 %v384_v9  ;;  %v380_v13 = vld [vmem:[#allocation8 + $0x18] sm:$0xff]  ;;  %v378_v15 = vld [vmem:[#allocation8 + $0x8] sm:$0xff]  ;;  %v377_v16 = vld [vmem:[#allocation8] sm:$0xff] }
  0x14   :  { %v393_v17 = vld [vmem:[%s559_s2] ss:$0 sm:$0xff] }
  0x15   :  { %v394_v41 = vld [vmem:[%s561_s4] ss:$0 sm:$0xff] }
  0x17   :  { %152 = vmatpush.bf16.msra.mxu0 %v374_v2  ;;  %250 = vmatpush.bf16.msra.mxu1 %v383_v10 }
  0x1b   :  { %153 = vmatpush.bf16.msra.mxu0 %v373_v3  ;;  %251 = vmatpush.bf16.msra.mxu1 %v382_v11 }
  0x1f   :  { %154 = vmatpush.bf16.msra.mxu0 %v372_v4  ;;  %252 = vmatpush.bf16.msra.mxu1 %v381_v12 }
  0x23   :  { %155 = vmatpush.bf16.msra.mxu0 %v371_v5  ;;  %253 = vmatpush.bf16.msra.mxu1 %v380_v13 }
  0x27   :  { %156 = vmatpush.bf16.msra.mxu0 %v370_v6  ;;  %254 = vmatpush.bf16.msra.mxu1 %v379_v14 }
  0x2b   :  { %157 = vmatpush.bf16.msra.mxu0 %v369_v7  ;;  %255 = vmatpush.bf16.msra.mxu1 %v378_v15 }
  0x2e   :  { %158 = vmatmul.bf16.vlgmr.msra.gmra.mxu0 %v368_v8 }
  0x2f   :  { %256 = vmatpush.bf16.msra.mxu1 %v377_v16 }
  0xab   :  { %v159_v18 = vpop.f32.mrf.mxu0 }
  0xac   :  { %v160_v19 = vadd.f32 %v393_v17, %v159_v18 }
  0xae   :  { %v166_v20 = vmul.f32 %v160_v19, %v160_v19  ;;  %v164_v35 = vmul.f32 0.5, %v160_v19 }
  0xb0   :  { %v168_v21 = vmul.f32 %v166_v20, %v160_v19 }
  0xb2   :  { %v170_v22 = vmul.f32 0.044715, %v168_v21 }
  0xb3   :  { %v161_v23 = vpop.f32.mrf.mxu0 }
  0xb4   :  { %v162_v24 = vadd.f32 %v393_v17, %v161_v23  ;;  %v172_v25 = vadd.f32 %v170_v22, %v160_v19 }
  0xb6   :  { %v167_v26 = vmul.f32 %v162_v24, %v162_v24  ;;  %v174_v28 = vmul.f32 0.7978846, %v172_v25  ;;  %v165_v36 = vmul.f32 0.5, %v162_v24 }
  0xb8   :  { %v169_v27 = vmul.f32 %v167_v26, %v162_v24  ;;  %395 = vtanh.f32 %v174_v28 }
  0xba   :  { %v171_v29 = vmul.f32 0.044715, %v169_v27 }
  0xbc   :  { %v173_v30 = vadd.f32 %v171_v29, %v162_v24 }
  0xbe   :  { %v175_v31 = vmul.f32 0.7978846, %v173_v30  ;;  %v396_v32 = vpop.eup %395 }
  0xbf   :  { %v178_v33 = vadd.f32 1.0, %v396_v32 }
  0xc0   :  { %397 = vtanh.f32 %v175_v31 }
  0xc1   :  { %v180_v38 = vmul.f32 %v178_v33, %v164_v35 }
  0xc6   :  { %v398_v34 = vpop.eup %397 }
  0xc7   :  { %v179_v37 = vadd.f32 1.0, %v398_v34 }
  0xc9   :  { %v181_v39 = vmul.f32 %v179_v37, %v165_v36 }
  0xcb   :  { %v184_v40 = vpack.c.bf16 %v181_v39, %v180_v38 }
  0xcd   :  { %257 = vmatmul.bf16.vlgmr.msra.gmra.mxu1 %v184_v40 }
 0x14a   :  { %v258_v42 = vpop.f32.mrf.mxu1 }
 0x14b   :  { %v276_v43 = vadd.f32 %v394_v41, %v258_v42 }
 0x14d   :  { %278 = vst [vmem:[#allocation9] sm:$0xff] %v276_v43 }
 0x152   :  { %v260_v44 = vpop.f32.mrf.mxu1 }
 0x153   :  { %v277_v45 = vadd.f32 %v394_v41, %v260_v44 }
 0x155   :  { %279 = vst [vmem:[#allocation9 + $0x8] sm:$0xff] %v277_v45 }
 0x156   :  { %292 = dma.vmem_to_hbm [thread:$0]  %s285_s11, 256, %s287_s14, [#allocation5], %s507_s15, %s507_s15, %s508_s16  }
 0x157   :  { %499 = dma.done.wait [#allocation5], 256  }
 0x158   :  { %500 = vsyncadd [#allocation5], 4294967040 }
 0x159   :  { %297 = vsyncpa [#allocation4], 1 }
 0x15a   :  { %298 = vsyncpa [#allocation7], 1 }
 0x15b   :  { %299 = vsyncpa [#allocation5], 1 }

</bundles_post_ra>
